<compile_context>
chip_gen: v5e
topology: v5e:2x2
jax: 0.10.0
libtpu: 0.0.40
codegen_flags: <defaults>
</compile_context>

<pallas_src>
import math

import numpy as np
import jax
import jax.numpy as jnp
from jax.experimental import pallas as pl
from jax.experimental.pallas import tpu as pltpu


_LANE = 128
_SUBLANE = 8
_HEADROOM = 16 * 1024 * 1024   # VMEM left for compiler scratch / spills


def _round_up(x, m):
    return (x + m - 1) // m * m


def _vmem_budget():
    """Per-generation VMEM budget: capacity minus fixed headroom.

    v7x (64 MiB/TC) -> ~48 MiB, v5e/v6e (128 MiB) -> ~112 MiB.  Falls back to
    the conservative v7x figure if the query is unavailable."""
    try:
        cap = int(pltpu.get_tpu_info().vmem_capacity_bytes)
    except Exception:
        cap = 64 * 1024 * 1024
    return max(cap - _HEADROOM, 16 * 1024 * 1024)


def _tile_and_pad(dim, target, quantum):
    """Pick (tile, padded_dim) with tile dividing padded_dim.

    Either tile == dim (full-extent block, always legal) or tile is a multiple
    of `quantum`.  Never falls back to an over-sized full-dim block: if no
    divisor of `dim` works, the dim is padded up to a tile multiple."""
    if dim <= target:
        return dim, dim
    t = (target // quantum) * quantum
    while t >= quantum:
        if dim % t == 0:
            return t, dim
        t -= quantum
    t = (target // quantum) * quantum
    return t, _round_up(dim, t)


def _fit_tiles(N, Fin, Fp, adj_isz, budget, row_target, k_target):
    """Shrink k/row tile targets until the double-buffered footprint fits."""
    row_t, k_t = row_target, k_target
    while True:
        tn, np_row = _tile_and_pad(N, row_t, _SUBLANE)
        tk, np_k = _tile_and_pad(N, k_t, _LANE)
        foot = (
            2 * tn * tk * adj_isz      # adj block (double-buffered)
            + 2 * tk * Fin * 4         # x block (f32)
            + 2 * Fin * Fp * 4         # resident weight
            + 2 * Fp * 4               # bias
            + 2 * tn * Fp * 4          # output block (doubles as f32 accumulator)
        )
        if foot <= budget or (row_t <= 2 * _SUBLANE and k_t <= 2 * _LANE):
            return tn, np_row, tk, np_k
        if k_t > 2 * _LANE:
            k_t //= 2
        else:
            row_t //= 2


# --------------------------------------------------------------------------
# Fused kernel: out[b, i-tile] += adj[b, i-tile, k-tile] @ (x[b, k-tile] @ W)
# --------------------------------------------------------------------------
def _make_gcn_kernel(has_bias):
    def body(adj_ref, x_ref, w_ref, b_ref, o_ref):
        k = pl.program_id(2)
        # Recompute the support tile on the fly: (TK, Fin) @ (Fin, Fp), f32.
        s = jnp.dot(x_ref[...], w_ref[...], preferred_element_type=jnp.float32)
        # adj may be streamed as bf16 (halved HBM traffic); compute/accumulate f32.
        contrib = jnp.dot(adj_ref[...].astype(jnp.float32), s,
                          preferred_element_type=jnp.float32)

        @pl.when(k == 0)
        def _():
            o_ref[...] = (contrib + b_ref[...]) if has_bias else contrib

        @pl.when(k > 0)
        def _():
            o_ref[...] = o_ref[...] + contrib

    if has_bias:
        def kernel(adj_ref, x_ref, w_ref, b_ref, o_ref):
            body(adj_ref, x_ref, w_ref, b_ref, o_ref)
    else:
        def kernel(adj_ref, x_ref, w_ref, o_ref):
            body(adj_ref, x_ref, w_ref, None, o_ref)
    return kernel


# --------------------------------------------------------------------------
# Public wrapper
# --------------------------------------------------------------------------
def graph_convolution(x, adj, weight, bias=None, *, adj_dtype=None,
                      row_tile=1024, k_tile=2048, adj_buffers=2):
    """Pallas GCN layer forward: adj @ (x @ W) + bias.

    x:      (B, N, Fin) float32
    adj:    (B, N, N)   float32
    weight: (Fin, Fout) float32
    bias:   (Fout,)     float32 or None
    adj_dtype: optional streaming dtype for adj (e.g. jnp.bfloat16) to halve
               HBM traffic of the dominant operand; x@W and all accumulation
               stay float32.  Default None keeps exact float32 semantics.
    adj_buffers: pipeline depth for the adj input stream (try 3 on v7x).
    Returns (B, N, Fout) in x.dtype.
    """
    B, N, Fin = x.shape
    assert adj.shape == (B, N, N), "adj must be (B, N, N)"
    Fin_w, Fout = weight.shape
    assert Fin_w == Fin, "weight in_features mismatch"

    out_dtype = x.dtype
    adj_cdtype = jnp.dtype(adj_dtype) if adj_dtype is not None else jnp.dtype(jnp.float32)

    # Lane-dense output: pad feature axis to a multiple of 128 (unmasked vst).
    # TODO(synk): pad to 256 when Fout > 128 once the kernel is MXU-bound
    # (v6e/v7x MXUs are 256 wide); irrelevant while HBM-bound.
    Fp = max(_LANE, _round_up(Fout, _LANE))

    budget = _vmem_budget()
    TN, Np_row, TK, Np_k = _fit_tiles(
        N, Fin, Fp, adj_cdtype.itemsize, budget,
        row_target=row_tile, k_target=k_tile)

    # v7x megacore: ensure the sharded ("parallel") grid axes have >= 2 steps
    # so both TensorCores get work (no-op on single-TC v5e/v6e).
    if B * (Np_row // TN) < 2 and N > _SUBLANE:
        TN = _round_up(-(-N // 2), _SUBLANE)
        Np_row = _round_up(N, TN)

    n_row = Np_row // TN
    n_k = Np_k // TK

    # Zero-pad to tile multiples (no-op when shapes divide).  Padded adj
    # columns are zero so extra k-steps contribute nothing; padded output
    # rows are sliced off below.
    adj_p = jnp.pad(adj, ((0, 0), (0, Np_row - N), (0, Np_k - N))).astype(adj_cdtype)
    x_p = jnp.pad(x, ((0, 0), (0, Np_k - N), (0, 0))).astype(jnp.float32)
    w_p = jnp.pad(weight, ((0, 0), (0, Fp - Fout))).astype(jnp.float32)

    has_bias = bias is not None
    kernel = _make_gcn_kernel(has_bias)

    adj_spec_kwargs = {}
    if adj_buffers != 2:
        adj_spec_kwargs["pipeline_mode"] = pl.Buffered(adj_buffers)

    in_specs = [
        pl.BlockSpec((pl.Squeezed(), TN, TK), lambda b, i, k: (b, i, k),
                     **adj_spec_kwargs),
        pl.BlockSpec((pl.Squeezed(), TK, Fin), lambda b, i, k: (b, k, 0)),
        # Constant block index -> W stays resident in VMEM across the grid.
        pl.BlockSpec((Fin, Fp), lambda b, i, k: (0, 0)),
    ]
    operands = [adj_p, x_p, w_p]
    if has_bias:
        bias_p = jnp.pad(bias.reshape(1, Fout).astype(jnp.float32),
                         ((0, 0), (0, Fp - Fout)))
        in_specs.append(pl.BlockSpec((1, Fp), lambda b, i, k: (0, 0)))
        operands.append(bias_p)

    adj_isz = adj_cdtype.itemsize
    cost = pl.CostEstimate(
        flops=2 * B * Np_row * Np_k * Fp              # adjacency matmul
        + 2 * B * n_row * Np_k * Fin * Fp,            # fused x @ W recompute
        transcendentals=0,
        bytes_accessed=(
            B * Np_row * Np_k * adj_isz               # adj streamed once
            + n_row * B * Np_k * Fin * 4              # x re-read once per row tile
            + Fin * Fp * 4                            # resident weight
            + (Fp * 4 if has_bias else 0)             # bias
            + B * Np_row * Fp * 4                     # f32 output
        ),
    )

    out_p = pl.pallas_call(
        kernel,
        out_shape=jax.ShapeDtypeStruct((B, Np_row, Fp), jnp.float32),
        grid_spec=pltpu.PrefetchScalarGridSpec(
            num_scalar_prefetch=0,
            grid=(B, n_row, n_k),
            in_specs=in_specs,
            out_specs=pl.BlockSpec((pl.Squeezed(), TN, Fp),
                                   lambda b, i, k: (b, i, 0)),
        ),
        compiler_params=pltpu.CompilerParams(
            dimension_semantics=("parallel", "parallel", "arbitrary"),
            vmem_limit_bytes=budget,
        ),
        cost_estimate=cost,
    )(*operands)

    return out_p[:, :N, :Fout].astype(out_dtype)


if __name__ == "__main__":
    # Small shapes consistent with the module: B=2 graphs, N=16 nodes,
    # in_features=8, out_features=32.
    B, N, Fin, Fout = 2, 16, 8, 32

    key = jax.random.PRNGKey(0)
    kx, kadj, kw, kb = jax.random.split(key, 4)

    x = jax.random.normal(kx, (B, N, Fin), dtype=jnp.float32)
    adj = jax.random.uniform(kadj, (B, N, N), dtype=jnp.float32)

    # Parameter init mirroring reset_parameters(): U(-stdv, stdv), stdv=1/sqrt(Fout)
    stdv = 1.0 / math.sqrt(Fout)
    weight = jax.random.uniform(kw, (Fin, Fout), minval=-stdv, maxval=stdv,
                                dtype=jnp.float32)
    bias = jax.random.uniform(kb, (Fout,), minval=-stdv, maxval=stdv,
                              dtype=jnp.float32)

    # Reference computed on host in float64 (same semantics as the PyTorch forward).
    x_h = np.asarray(x, dtype=np.float64)
    adj_h = np.asarray(adj, dtype=np.float64)
    w_h = np.asarray(weight, dtype=np.float64)
    b_h = np.asarray(bias, dtype=np.float64)
    ref = np.einsum("bnm,bmf->bnf", adj_h, x_h @ w_h)

    # f32 path, with bias (exact-semantics default).
    out = jax.block_until_ready(graph_convolution(x, adj, weight, bias))
    assert out.shape == (B, N, Fout)
    assert np.allclose(np.asarray(out), ref + b_h, atol=5e-4, rtol=5e-4)

    # f32 path, bias=None (specialized kernel, no zero-bias tensor).
    out_nb = jax.block_until_ready(graph_convolution(x, adj, weight, None))
    assert np.allclose(np.asarray(out_nb), ref, atol=5e-4, rtol=5e-4)

    # bf16-streamed adjacency (f32 compute/accumulation) — loose tolerance.
    out_bf = jax.block_until_ready(
        graph_convolution(x, adj, weight, bias, adj_dtype=jnp.bfloat16))
    assert np.allclose(np.asarray(out_bf), ref + b_h, atol=5e-2, rtol=5e-2)

    print("KERNEL_OK")
</pallas_src>

<mosaic_0001>
module attributes {stable_mosaic.version = 11 : i64} {
  func.func @kernel(%arg0: i32, %arg1: i32, %arg2: i32, %arg3: memref<1x16x16xf32, #tpu.memory_space<vmem>>, %arg4: memref<1x16x8xf32, #tpu.memory_space<vmem>>, %arg5: memref<8x128xf32, #tpu.memory_space<vmem>>, %arg6: memref<1x128xf32, #tpu.memory_space<vmem>>, %arg7: memref<1x16x128xf32, #tpu.memory_space<vmem>>) attributes {dimension_semantics = [#tpu.dimension_semantics<parallel>, #tpu.dimension_semantics<parallel>, #tpu.dimension_semantics<arbitrary>], iteration_bounds = array<i64: 2, 1, 1>, scalar_prefetch = 0 : i64, scratch_operands = 0 : i64, tpu.core_type = #tpu.core_type<tc>, window_params = [{transform_indices = @transform_0, window_bounds = array<i64: 1, 16, 16>}, {transform_indices = @transform_1, window_bounds = array<i64: 1, 16, 8>}, {pipeline_mode = #tpu.pipeline_mode<synchronous>, transform_indices = @transform_2, window_bounds = array<i64: 8, 128>}, {pipeline_mode = #tpu.pipeline_mode<synchronous>, transform_indices = @transform_3, window_bounds = array<i64: 1, 128>}, {transform_indices = @transform_4, window_bounds = array<i64: 1, 16, 128>}]} {
    %c0 = arith.constant 0 : index
    %c0_0 = arith.constant 0 : index
    %c0_1 = arith.constant 0 : index
    %0 = vector.load %arg4[%c0, %c0_0, %c0_1] : memref<1x16x8xf32, #tpu.memory_space<vmem>>, vector<1x16x8xf32>
    %1 = vector.shape_cast %0 : vector<1x16x8xf32> to vector<16x8xf32>
    %c0_2 = arith.constant 0 : index
    %c0_3 = arith.constant 0 : index
    %2 = vector.load %arg5[%c0_2, %c0_3] : memref<8x128xf32, #tpu.memory_space<vmem>>, vector<8x128xf32>
    %cst = arith.constant dense<0.000000e+00> : vector<16x128xf32>
    %3 = tpu.matmul %1, %2, %cst {dimension_numbers = #tpu.dot_dimension_numbers<[1], [0], [0], [1], [0, 0, 1, 1], [], []>} : vector<16x8xf32>, vector<8x128xf32>, vector<16x128xf32> -> vector<16x128xf32>
    %c0_4 = arith.constant 0 : index
    %c0_5 = arith.constant 0 : index
    %c0_6 = arith.constant 0 : index
    %4 = vector.load %arg3[%c0_4, %c0_5, %c0_6] : memref<1x16x16xf32, #tpu.memory_space<vmem>>, vector<1x16x16xf32>
    %5 = vector.shape_cast %4 : vector<1x16x16xf32> to vector<16x16xf32>
    %cst_7 = arith.constant dense<0.000000e+00> : vector<16x128xf32>
    %6 = tpu.matmul %5, %3, %cst_7 {dimension_numbers = #tpu.dot_dimension_numbers<[1], [0], [0], [1], [0, 0, 1, 1], [], []>} : vector<16x16xf32>, vector<16x128xf32>, vector<16x128xf32> -> vector<16x128xf32>
    %c0_i32 = arith.constant 0 : i32
    %7 = arith.cmpi eq, %arg2, %c0_i32 : i32
    %8 = arith.extui %7 : i1 to i32
    %c0_i32_8 = arith.constant 0 : i32
    %9 = arith.cmpi ne, %8, %c0_i32_8 : i32
    scf.if %9 {
      %c0_11 = arith.constant 0 : index
      %c0_12 = arith.constant 0 : index
      %13 = vector.load %arg6[%c0_11, %c0_12] : memref<1x128xf32, #tpu.memory_space<vmem>>, vector<1x128xf32>
      %14 = vector.broadcast %13 : vector<1x128xf32> to vector<16x128xf32>
      %15 = arith.addf %6, %14 : vector<16x128xf32>
      %c0_13 = arith.constant 0 : index
      %c0_14 = arith.constant 0 : index
      %c0_15 = arith.constant 0 : index
      %16 = vector.load %arg7[%c0_13, %c0_14, %c0_15] : memref<1x16x128xf32, #tpu.memory_space<vmem>>, vector<1x16x128xf32>
      %17 = vector.shape_cast %16 : vector<1x16x128xf32> to vector<16x128xf32>
      %18 = vector.shape_cast %15 : vector<16x128xf32> to vector<1x16x128xf32>
      tpu.vector_store %arg7[%c0_13, %c0_14, %c0_15], %18 {strides = array<i32>} : memref<1x16x128xf32, #tpu.memory_space<vmem>>, vector<1x16x128xf32>,
    } else {
    }
    %c0_i32_9 = arith.constant 0 : i32
    %10 = arith.cmpi sgt, %arg2, %c0_i32_9 : i32
    %11 = arith.extui %10 : i1 to i32
    %c0_i32_10 = arith.constant 0 : i32
    %12 = arith.cmpi ne, %11, %c0_i32_10 : i32
    scf.if %12 {
      %c0_11 = arith.constant 0 : index
      %c0_12 = arith.constant 0 : index
      %c0_13 = arith.constant 0 : index
      %13 = vector.load %arg7[%c0_11, %c0_12, %c0_13] : memref<1x16x128xf32, #tpu.memory_space<vmem>>, vector<1x16x128xf32>
      %14 = vector.shape_cast %13 : vector<1x16x128xf32> to vector<16x128xf32>
      %15 = arith.addf %14, %6 : vector<16x128xf32>
      %c0_14 = arith.constant 0 : index
      %c0_15 = arith.constant 0 : index
      %c0_16 = arith.constant 0 : index
      %16 = vector.load %arg7[%c0_14, %c0_15, %c0_16] : memref<1x16x128xf32, #tpu.memory_space<vmem>>, vector<1x16x128xf32>
      %17 = vector.shape_cast %16 : vector<1x16x128xf32> to vector<16x128xf32>
      %18 = vector.shape_cast %15 : vector<16x128xf32> to vector<1x16x128xf32>
      tpu.vector_store %arg7[%c0_14, %c0_15, %c0_16], %18 {strides = array<i32>} : memref<1x16x128xf32, #tpu.memory_space<vmem>>, vector<1x16x128xf32>,
    } else {
    }
    return
  }
  func.func @transform_0(%arg0: i32, %arg1: i32, %arg2: i32) -> (i32, i32, i32) {
    %c0_i32 = arith.constant 0 : i32
    return %arg0, %arg1, %arg2 : i32, i32, i32
  }
  func.func @transform_1(%arg0: i32, %arg1: i32, %arg2: i32) -> (i32, i32, i32) {
    %c0_i32 = arith.constant 0 : i32
    %c0_i32_0 = arith.constant 0 : i32
    return %arg0, %arg2, %c0_i32 : i32, i32, i32
  }
  func.func @transform_2(%arg0: i32, %arg1: i32, %arg2: i32) -> (i32, i32) {
    %c0_i32 = arith.constant 0 : i32
    %c0_i32_0 = arith.constant 0 : i32
    %c0_i32_1 = arith.constant 0 : i32
    return %c0_i32, %c0_i32_0 : i32, i32
  }
  func.func @transform_3(%arg0: i32, %arg1: i32, %arg2: i32) -> (i32, i32) {
    %c0_i32 = arith.constant 0 : i32
    %c0_i32_0 = arith.constant 0 : i32
    %c0_i32_1 = arith.constant 0 : i32
    return %c0_i32, %c0_i32_0 : i32, i32
  }
  func.func @transform_4(%arg0: i32, %arg1: i32, %arg2: i32) -> (i32, i32, i32) {
    %c0_i32 = arith.constant 0 : i32
    %c0_i32_0 = arith.constant 0 : i32
    return %arg0, %arg1, %c0_i32 : i32, i32, i32
  }
}

</mosaic_0001>

<bundles_post_ra>
// kernel: tpu_custom_call.1
= control target key start
LH: loop header
LB: loop body
LE: loop exit
PB: predicated region body
PF: predicated region fallthrough
CT: control target
= control target key end

     0   :  { %9 = vsyncpa [#allocation3], 0  ;;  %s785_s0 = inlined_call_operand.vmem [shape: f32[2,16,16], index: 0, kind: input, shape index: {}]   ;;  %s786_s1 = inlined_call_operand.vmem [shape: f32[2,16,8], index: 1, kind: input, shape index: {}]   ;;  %s787_s2 = inlined_call_operand.vmem [shape: f32[8,128], index: 2, kind: input, shape index: {}]   ;;  %s788_s3 = inlined_call_operand.vmem [shape: f32[1,128], index: 3, kind: input, shape index: {}]   ;;  %s789_s4 = inlined_call_operand.hbm [shape: f32[2,16,128], index: 4, kind: output, shape index: {}]  }
   0x1   :  { %11 = vsyncpa [#allocation3 + $0x1], 0  ;;  %s679_s15 = smov 0   ;;  %s681_s16 = smov 0  }
   0x2   :  { %s683_s17 = smov 0   ;;  %s685_s18 = smov 0  }
   0x3   :  { %s687_s19 = smov 0   ;;  %s689_s20 = smov 0  }
   0x4 LB: > { %s489_s21 = sadd.s32 4294967295, %s650_s20   ;;  %s490_s22 = sadd.s32 4294967294, %s650_s20   ;;  %s650_s20 = sphi %s689_s20, %s17_s20   ;;  %s646_s19 = sphi %s687_s19, %s796_s19   ;;  %s642_s18 = sphi %s685_s18, %s795_s18   ;;  %s638_s17 = sphi %s683_s17, %s794_s17   ;;  %s634_s16 = sphi %s681_s16, %s793_s16   ;;  %s630_s15 = sphi %s679_s15, %s792_s15  }
   0x5   : > { %s36_s23 = sadd.s32 1, %s646_s19  ;;  %s145_s24 = sadd.s32 1, %s638_s17 }
   0x6   : > { %p38_p0 = scmp.ge.s32.totalorder %s36_s23, 2  ;;  %p155_p1 = scmp.ne.s32.totalorder %s638_s17, %s634_s16 }
   0x7   : > { %p156_p2 = scmp.eq.s32.totalorder %s489_s21, 1  ;;  %p161_p3 = scmp.ne.s32.totalorder %s634_s16, %s630_s15 }
   0x8   : > { %s798_s23 = smov (%p38_p0, %s36_s23), 0  ;;  %p162_p5 = scmp.eq.s32.totalorder %s490_s22, 1 }
   0x9   : > { %p719_p4 = por %p156_p2, %p155_p1  ;;  %s140_s26 = ssub.s32 %s646_s19, %s798_s23 }
   0xa   : > { %p493_p6 = scmp.ge.s32.totalorder %s650_s20, 1  ;;  %p143_p7 = scmp.eq.s32.totalorder %s140_s26, 0 }
   0xb   : > { %p726_p8 = por %p162_p5, %p161_p3  ;;  %p215_p9 = scmp.lt.s32.totalorder %s650_s20, 3 }
   0xc   : > { %s732_s28 = scalar_select %p143_p7, %s638_s17, %s145_s24  }
   0xd   : > { %p216_p10 = pnand %p493_p6, %p215_p9 }
   0xe   : > { %p258_p11 = scmp.lt.s32.totalorder (!%p216_p10), %s642_s18, 1  ;;  %s254_s13 = sand.u32 (!%p216_p10), 1, %s634_s16  }
   0xf   : > { %219 = sbr.rel (%p216_p10) target bundleno = 298 (0x12a), region = 36  ;;  %s494_s14 = sshll.u32 (!%p216_p10), %s254_s13, 4 }
  0x10   : > { %s510_s24 = sshll.u32 (!%p216_p10), %s642_s18, 4  ;;  %s369_s8 = scalar_lea.sflag (!%p216_p10), [#allocation3], %s254_s13 }
  0x11   : > { %s382_s30 = scalar_lea.hbm (!%p216_p10), %s789_s4, %s510_s24 }
  0x12   : > { %s385_s7 = sshll.u32 (!%p216_p10), %s382_s30, 4  ;;  %s386_s7 = int_to_ptr.hbm [resolvable:$true] %s385_s7 }
  0x14   : > { %v283_v0 = vld [vmem:[%s787_s2] sm:$0xff]  ;;  %s259_s5 = scalar_select %p258_p11, %s642_s18, 1  ;;  %vm284_vm0 = vcmask 64512   ;;  %vm316_vm1 = vcmask 130048  }
  0x15   : > { %511 = vmatpush.msra.mxu3 %v283_v0  ;;  %306 = vmatpush.msra.mxu0 %v283_v0  ;;  %v571_v7 = vld [vmem:[%s788_s3] ss:$0 sm:$0xff] }
  0x16   : > { %s508_s6 = sshll.u32 %s259_s5, 4  ;;  %s256_s5 = scalar_lea.vmem [#allocation2], %s494_s14 }
  0x17   : > { %s278_s9 = scalar_lea.vmem %s786_s1, %s508_s6  ;;  %s268_s12 = scalar_lea.vmem %s785_s0, %s508_s6 }
  0x18   : > { %v282_v1 = vld [vmem:[%s278_s9 + $0x8] sm:$0xff]  ;;  %v281_v2 = vld [vmem:[%s278_s9] sm:$0xff]  ;;  %s383_s6 = sshll.u32 %s256_s5, 4  ;;  %s586_s9 = sshra.s32 %s386_s7, 4  ;;  %s384_s6 = int_to_ptr.vmem [resolvable:$true] %s383_s6  ;;  %s587_s9 = int_to_ptr.hbm [resolvable:$true] %s586_s9 }
  0x19   : > { %500 = vmatmul.msk.f32.vlgmr.msra.gmra.mxu3 %vm284_vm0, %v282_v1  ;;  %499 = vmatmul.msk.f32.vlgmr.msra.gmra.mxu0 %vm284_vm0, %v281_v2  ;;  %v315_v5 = vld [vmem:[%s268_s12 + $0x8] sm:$0xff]  ;;  %v314_v6 = vld [vmem:[%s268_s12] sm:$0xff]  ;;  %s588_s18 = scalar_lea.hbm %s587_s9, 16  ;;  %s592_s12 = scalar_lea.hbm %s789_s4, 32 }
  0x1a   : > { %p589_p12 = scmp.ne.s32.totalorder %s587_s9, %s588_s18  ;;  %p593_p1 = scmp.lt.s32.totalorder %s587_s9, %s789_s4 }
  0x1b   : > { %p594_p2 = scmp.lt.s32.totalorder %s592_s12, %s588_s18 }
  0x1c   : > { %p590_p13 = pnand %p589_p12, %p719_p4 }
  0x1d   : > { %p595_p3 = por %p594_p2, %p593_p1 }
  0x1e   : > { %p591_p0 = pneg %p590_p13 }
  0x20   : > { %p596_p5 = pnand %p595_p3, %p591_p0 }
  0x96   : > { %v308_v4 = vpop.f32.mrf.mxu0 }
  0x9c   : > { %v311_v3 = vpop.f32.mrf.mxu3 }
  0x9d   : > { %337 = vmatpush.msra.mxu1 %v311_v3  ;;  %512 = vmatpush.msra.mxu2 %v311_v3 }
  0x9f   : > { %338 = vmatpush.msra.mxu1 %v308_v4  ;;  %513 = vmatpush.msra.mxu2 %v308_v4 }
  0xa0   : > { %502 = vmatmul.msk.f32.vlgmr.msra.gmra.mxu2 %vm316_vm1, %v315_v5  ;;  %501 = vmatmul.msk.f32.vlgmr.msra.gmra.mxu1 %vm316_vm1, %v314_v6 }
 0x11d   : > { %v340_v8 = vpop.f32.mrf.mxu1 }
 0x11e   : > { %v354_v9 = vadd.f32 %v571_v7, %v340_v8 }
 0x120   : > { %356 = vst [vmem:[%s256_s5] sm:$0xff] %v354_v9 }
 0x123   : > { %v343_v10 = vpop.f32.mrf.mxu2 }
 0x124   : > { %v355_v11 = vadd.f32 %v571_v7, %v343_v10 }
 0x126   : > { %357 = vst [vmem:[%s256_s5 + $0x8] sm:$0xff] %v355_v11 }
 0x127   : > { %599 = shalt.err (!%p596_p5)
}
 0x128   : > { %s652_s13 = smov 128   ;;  %s653_s22 = smov 8  }
 0x129   : > { %514 = dma.vmem_to_hbm [thread:$0]  (%p719_p4), %s384_s6, 256, %s386_s7, %s369_s8, %s652_s13, %s652_s13, %s653_s22  }
 0x12a PF: > { %p520_p6 = scmp.ge.s32.totalorder %s650_s20, 2  ;;  %s400_s24 = sand.u32 1, %s630_s15  }
 0x12b   : > { %s401_s26 = scalar_lea.sflag [#allocation3], %s400_s24 }
 0x12c   : > { %p517_p7 = pnand %p520_p6, %p726_p8 }
 0x12e   : > { %p518_p9 = pneg %p517_p7 }
 0x130   : > { %625 = dma.done.wait (%p518_p9), %s401_s26, 256  }
 0x131   : > { %627 = vsyncadd (%p518_p9), %s401_s26, 4294967040  ;;  %s17_s20 = sadd.s32 1, %s650_s20   ;;  %s792_s15 = smov %s634_s16 }
 0x132   : > { %p14_p10 = scmp.ge.s32.totalorder %s17_s20, 4   ;;  %s793_s16 = smov %s638_s17 }
 0x133   : > { %s794_s17 = smov %s732_s28  ;;  %s795_s18 = smov %s646_s19 }
 0x134   : > { %s796_s19 = smov %s798_s23  ;;  %16 = sbr.rel (!%p14_p10) target bundleno = 4 (0x4), region = 82 }
 0x139   :  { %407 = vsyncpa [#allocation3], 1 }
 0x13a   :  { %409 = vsyncpa [#allocation3 + $0x1], 1 }

</bundles_post_ra>
